<compile_context>
chip_gen: v5e
topology: v5e:2x2
jax: 0.10.0
libtpu: 0.0.40
codegen_flags: <defaults>
</compile_context>

<pallas_src>
import functools

import jax
import jax.numpy as jnp
from jax.experimental import pallas as pl
from jax.experimental.pallas import tpu as pltpu


def _layernorm_kernel(x_ref, alpha_ref, bias_ref, o_ref, *, eps):
    # x_ref: (tile_rows, features); alpha_ref / bias_ref: (1, features).
    x = x_ref[...].astype(jnp.float32)
    n = x.shape[-1]                       # static
    mean = jnp.mean(x, axis=-1, keepdims=True)
    diff = x - mean
    # PyTorch .std() is unbiased (ddof=1) by default; 1/(n-1) is a
    # compile-time constant, so this is a multiply, not a divide.
    var = jnp.sum(diff * diff, axis=-1, keepdims=True) * jnp.float32(1.0 / (n - 1))
    std = jnp.sqrt(var)
    # One per-row reciprocal on the EUP (approx vrcp, essentially free) instead
    # of a full-tile divide. The module divides by (std + eps), NOT
    # sqrt(var + eps), so std + eps > 0 always.
    inv = pl.reciprocal(std + eps, approx=True)
    alpha = alpha_ref[...].astype(jnp.float32)
    bias = bias_ref[...].astype(jnp.float32)
    out = (diff * inv) * alpha + bias
    o_ref[...] = out.astype(o_ref.dtype)


def _pick_tile_rows(rows, features, itemsize, tile_bytes_budget):
    """Largest sublane-aligned row tile within the per-tile VMEM budget."""
    # Sublane packing: 8 rows for 4-byte, 16 for 2-byte, 32 for 1-byte dtypes.
    sublane = max(8, 32 // max(1, itemsize))
    by_budget = (tile_bytes_budget // max(1, features * itemsize)) // sublane * sublane
    by_budget = max(sublane, by_budget)
    if by_budget >= rows:
        # Everything fits in one tile. If the rows split cleanly into two
        # sublane-aligned halves, use two grid steps so v7x's two TensorCores
        # can each take half (harmless no-op on v5e/v6e).
        half = rows // 2
        if half >= sublane and half % sublane == 0:
            return half
        return rows  # single block == full array dim (always a legal block)
    return by_budget


def layer_normalization(x, alpha, bias, eps=1e-6,
                        tile_bytes_budget=2 * 1024 * 1024):
    """x: (..., features); alpha, bias: (features,)."""
    orig_shape = x.shape
    features = orig_shape[-1]
    if features < 2:
        # Unbiased std (ddof=1) is undefined for a single element.
        raise ValueError("features must be >= 2 for unbiased std (ddof=1)")

    rows = 1
    for d in orig_shape[:-1]:
        rows *= d
    x2d = x.reshape(rows, features)
    alpha2d = alpha.reshape(1, features)
    bias2d = bias.reshape(1, features)

    itemsize = x2d.dtype.itemsize
    tile_rows = _pick_tile_rows(rows, features, itemsize, tile_bytes_budget)
    grid = (pl.cdiv(rows, tile_rows),)  # tail block clipped by the runtime

    # Double-buffered in + out tiles (<= 4x budget) plus a few f32 temporaries.
    # 48 MiB fits v7x's 64 MiB physical VMEM with headroom and lifts the
    # 32 MiB scoped default on v5e/v6e for larger budgets.
    vmem_limit = int(min(100 * 2**20, max(48 * 2**20, 12 * tile_bytes_budget)))

    out = pl.pallas_call(
        functools.partial(_layernorm_kernel, eps=eps),
        out_shape=jax.ShapeDtypeStruct((rows, features), x.dtype),
        grid_spec=pltpu.PrefetchScalarGridSpec(
            num_scalar_prefetch=0,
            grid=grid,
            in_specs=[
                pl.BlockSpec((tile_rows, features), lambda i: (i, 0)),
                pl.BlockSpec((1, features), lambda i: (0, 0)),
                pl.BlockSpec((1, features), lambda i: (0, 0)),
            ],
            out_specs=pl.BlockSpec((tile_rows, features), lambda i: (i, 0)),
        ),
        compiler_params=pltpu.CompilerParams(
            dimension_semantics=("parallel",),
            vmem_limit_bytes=vmem_limit,
        ),
    )(x2d, alpha2d, bias2d)
    return out.reshape(orig_shape)


def _reference(x, alpha, bias, eps):
    mean = jnp.mean(x, axis=-1, keepdims=True)
    std = jnp.std(x, axis=-1, keepdims=True, ddof=1)
    return alpha * (x - mean) / (std + eps) + bias


if __name__ == "__main__":
    key = jax.random.PRNGKey(0)
    batch, seq, features = 2, 8, 32
    x = jax.random.normal(key, (batch, seq, features), dtype=jnp.float32)

    # Deterministic params matching nn.Parameter(torch.ones/zeros(features)).
    alpha = jnp.ones((features,), dtype=jnp.float32)
    bias = jnp.zeros((features,), dtype=jnp.float32)

    out = layer_normalization(x, alpha, bias, eps=1e-6)
    jax.block_until_ready(out)

    # Tolerance accounts for the approximate EUP reciprocal (~2^-12 rel error).
    ref = _reference(x, alpha, bias, 1e-6)
    assert jnp.allclose(out, ref, atol=5e-3, rtol=5e-3), "mismatch vs reference"

    # Also exercise the non-divisible / partial-tail path: rows=15 with a tiny
    # tile budget forces multiple grid steps with a clipped last block.
    x_odd = jax.random.normal(jax.random.PRNGKey(1), (3, 5, features),
                              dtype=jnp.float32)
    out_odd = layer_normalization(x_odd, alpha, bias, eps=1e-6,
                                  tile_bytes_budget=1024)
    jax.block_until_ready(out_odd)
    ref_odd = _reference(x_odd, alpha, bias, 1e-6)
    assert jnp.allclose(out_odd, ref_odd, atol=5e-3, rtol=5e-3), \
        "mismatch vs reference (partial tail)"

    print("KERNEL_OK")
</pallas_src>

<mosaic_0001>
module attributes {stable_mosaic.version = 11 : i64} {
  func.func @_layernorm_kernel(%arg0: i32, %arg1: memref<8x32xf32, #tpu.memory_space<vmem>>, %arg2: memref<1x32xf32, #tpu.memory_space<vmem>>, %arg3: memref<1x32xf32, #tpu.memory_space<vmem>>, %arg4: memref<8x32xf32, #tpu.memory_space<vmem>>) attributes {dimension_semantics = [#tpu.dimension_semantics<parallel>], iteration_bounds = array<i64: 2>, scalar_prefetch = 0 : i64, scratch_operands = 0 : i64, tpu.core_type = #tpu.core_type<tc>, window_params = [{transform_indices = @transform_0, window_bounds = array<i64: 8, 32>}, {pipeline_mode = #tpu.pipeline_mode<synchronous>, transform_indices = @transform_1, window_bounds = array<i64: 1, 32>}, {pipeline_mode = #tpu.pipeline_mode<synchronous>, transform_indices = @transform_2, window_bounds = array<i64: 1, 32>}, {transform_indices = @transform_3, window_bounds = array<i64: 8, 32>}]} {
    %c0 = arith.constant 0 : index
    %c0_0 = arith.constant 0 : index
    %0 = vector.load %arg1[%c0, %c0_0] : memref<8x32xf32, #tpu.memory_space<vmem>>, vector<8x32xf32>
    %cst = arith.constant dense<0.000000e+00> : vector<8xf32>
    %1 = vector.multi_reduction <add>, %0, %cst [1] : vector<8x32xf32> to vector<8xf32>
    %2 = vector.shape_cast %1 : vector<8xf32> to vector<8x1xf32>
    %cst_1 = arith.constant 3.200000e+01 : f32
    %3 = vector.broadcast %cst_1 : f32 to vector<8x1xf32>
    %4 = arith.divf %2, %3 : vector<8x1xf32>
    %5 = vector.broadcast %4 : vector<8x1xf32> to vector<8x32xf32>
    %6 = arith.subf %0, %5 : vector<8x32xf32>
    %7 = arith.mulf %6, %6 : vector<8x32xf32>
    %cst_2 = arith.constant dense<0.000000e+00> : vector<8xf32>
    %8 = vector.multi_reduction <add>, %7, %cst_2 [1] : vector<8x32xf32> to vector<8xf32>
    %9 = vector.shape_cast %8 : vector<8xf32> to vector<8x1xf32>
    %cst_3 = arith.constant 0.0322580636 : f32
    %10 = vector.broadcast %cst_3 : f32 to vector<8x1xf32>
    %11 = arith.mulf %9, %10 : vector<8x1xf32>
    %12 = math.sqrt %11 : vector<8x1xf32>
    %cst_4 = arith.constant 9.99999997E-7 : f32
    %13 = vector.broadcast %cst_4 : f32 to vector<8x1xf32>
    %14 = arith.addf %12, %13 : vector<8x1xf32>
    %15 = tpu.reciprocal %14 {approx = true} : vector<8x1xf32> -> vector<8x1xf32>
    %c0_5 = arith.constant 0 : index
    %c0_6 = arith.constant 0 : index
    %16 = vector.load %arg2[%c0_5, %c0_6] : memref<1x32xf32, #tpu.memory_space<vmem>>, vector<1x32xf32>
    %c0_7 = arith.constant 0 : index
    %c0_8 = arith.constant 0 : index
    %17 = vector.load %arg3[%c0_7, %c0_8] : memref<1x32xf32, #tpu.memory_space<vmem>>, vector<1x32xf32>
    %18 = vector.broadcast %15 : vector<8x1xf32> to vector<8x32xf32>
    %19 = arith.mulf %6, %18 : vector<8x32xf32>
    %20 = vector.broadcast %16 : vector<1x32xf32> to vector<8x32xf32>
    %21 = arith.mulf %19, %20 : vector<8x32xf32>
    %22 = vector.broadcast %17 : vector<1x32xf32> to vector<8x32xf32>
    %23 = arith.addf %21, %22 : vector<8x32xf32>
    %c0_9 = arith.constant 0 : index
    %c0_10 = arith.constant 0 : index
    %24 = vector.load %arg4[%c0_9, %c0_10] : memref<8x32xf32, #tpu.memory_space<vmem>>, vector<8x32xf32>
    tpu.vector_store %arg4[%c0_9, %c0_10], %23 {strides = array<i32>} : memref<8x32xf32, #tpu.memory_space<vmem>>, vector<8x32xf32>,
    return
  }
  func.func @transform_0(%arg0: i32) -> (i32, i32) {
    %c0_i32 = arith.constant 0 : i32
    %c0_i32_0 = arith.constant 0 : i32
    return %arg0, %c0_i32 : i32, i32
  }
  func.func @transform_1(%arg0: i32) -> (i32, i32) {
    %c0_i32 = arith.constant 0 : i32
    %c0_i32_0 = arith.constant 0 : i32
    %c0_i32_1 = arith.constant 0 : i32
    return %c0_i32, %c0_i32_0 : i32, i32
  }
  func.func @transform_2(%arg0: i32) -> (i32, i32) {
    %c0_i32 = arith.constant 0 : i32
    %c0_i32_0 = arith.constant 0 : i32
    %c0_i32_1 = arith.constant 0 : i32
    return %c0_i32, %c0_i32_0 : i32, i32
  }
  func.func @transform_3(%arg0: i32) -> (i32, i32) {
    %c0_i32 = arith.constant 0 : i32
    %c0_i32_0 = arith.constant 0 : i32
    return %arg0, %c0_i32 : i32, i32
  }
}

</mosaic_0001>

<bundles_post_ra>
// kernel: tpu_custom_call.1
= control target key start
LH: loop header
LB: loop body
LE: loop exit
PB: predicated region body
PF: predicated region fallthrough
CT: control target
= control target key end

     0   :  { %8 = vsyncpa [#allocation3], 0  ;;  %s726_s0 = inlined_call_operand.hbm [shape: f32[16,32], index: 0, kind: input, shape index: {}]   ;;  %s727_s1 = inlined_call_operand.hbm [shape: f32[1,32], index: 1, kind: input, shape index: {}]   ;;  %s728_s2 = inlined_call_operand.vmem [shape: f32[1,32], index: 2, kind: input, shape index: {}]   ;;  %s729_s3 = inlined_call_operand.hbm [shape: f32[16,32], index: 3, kind: output, shape index: {}]  }
   0x1   :  { %10 = vsyncpa [#allocation3 + $0x1], 0 }
   0x2   :  { %11 = vsyncpa [#allocation6], 0 }
   0x3   :  { %12 = vsyncpa [#allocation4], 0 }
   0x4   :  { %14 = vsyncpa [#allocation4 + $0x1], 0  ;;  %s578_s12 = smov 0   ;;  %s580_s13 = smov 0  }
   0x5   :  { %s582_s14 = smov 0   ;;  %s584_s15 = smov 0  }
   0x6 LB: > { %s599_s16 = sadd.s32 4294967295, %s554_s15   ;;  %s344_s17 = sadd.s32 4294967294, %s554_s15   ;;  %s554_s15 = sphi %s584_s15, %s739_s15   ;;  %s550_s14 = sphi %s582_s14, %s738_s14   ;;  %s546_s13 = sphi %s580_s13, %s737_s13   ;;  %s542_s12 = sphi %s578_s12, %s736_s12  }
   0x7   : > { %p40_p0 = scmp.ne.s32.totalorder %s546_s13, %s542_s12  ;;  %p41_p1 = scmp.eq.s32.totalorder %s599_s16, 0 }
   0x8   : > { %p106_p2 = scmp.eq.s32.totalorder %s599_s16, 1  ;;  %p112_p3 = scmp.eq.s32.totalorder %s344_s17, 1 }
   0x9   : > { %p608_p4 = por %p41_p1, %p40_p0  ;;  %p345_p5 = scmp.ge.s32.totalorder %s554_s15, 1 }
   0xa   : > { %p613_p6 = por %p112_p3, %p40_p0  ;;  %p119_p7 = scmp.lt.s32.totalorder %s554_s15, 3 }
   0xb   : > { %s131_s22 = sshll.u32 %s727_s1, 4  ;;  %s556_s24 = smov [#allocation5]   ;;  %s132_s22 = int_to_ptr.hbm [resolvable:$true] %s131_s22 }
   0xc   : > { %p621_p8 = pnand %p345_p5, %p119_p7  ;;  %s133_s25 = sshll.u32 %s556_s24, 4  ;;  %s134_s25 = int_to_ptr.vmem [resolvable:$true] %s133_s25 }
   0xd   : > { %s631_s26 = sadd.s32 1, %s554_s15   ;;  %s27_s27 = sadd.s32 1, %s550_s14 }
   0xe   : > { %p366_p10 = pneg %p621_p8  ;;  %s24_s28 = ssub.s32 %s554_s15, %s631_s26 }
   0xf   : > { %p25_p12 = scmp.eq.s32.totalorder %s24_s28, 0  ;;  %p34_p13 = scmp.ne.s32.totalorder %s550_s14, %s546_s13 }
  0x10   : > { %p367_p11 = pnand %p366_p10, %p41_p1  ;;  %p35_p0 = scmp.eq.s32.totalorder %s554_s15, 0 }
  0x11   : > { %s640_s29 = scalar_select %p25_p12, %s550_s14, %s27_s27  }
  0x12   : > { %369 = dma.hbm_to_vmem [thread:$0]  (!%p367_p11), %s132_s22, 16, %s134_s25, [#allocation6]  }
  0x13   : > { %p644_p3 = por %p106_p2, %p34_p13  ;;  %p379_p5 = scmp.lt.s32.totalorder %s554_s15, 2 }
  0x14   : > { %s147_s4 = sand.u32 1, %s550_s14   ;;  %s349_s5 = sshll.u32 %s554_s15, 3 }
  0x15   : > { %p36_p7 = por %p35_p0, %p34_p13  ;;  %s348_s6 = sshll.u32 %s147_s4, 3 }
  0x16   : > { %s155_s9 = scalar_lea.hbm %s726_s0, %s349_s5  ;;  %s151_s11 = scalar_lea.vmem [#allocation2], %s348_s6 }
  0x17   : > { %s157_s10 = sshll.u32 %s155_s9, 4  ;;  %s159_s17 = sshll.u32 %s151_s11, 4  ;;  %s158_s10 = int_to_ptr.hbm [resolvable:$true] %s157_s10  ;;  %s160_s17 = int_to_ptr.vmem [resolvable:$true] %s159_s17 }
  0x18   : > { %p654_p10 = pnand %p379_p5, %p36_p7  ;;  %s148_s21 = scalar_lea.sflag [#allocation3], %s147_s4 }
  0x19   : > { %s454_s22 = sshra.s32 %s158_s10, 4  ;;  %s461_s28 = scalar_lea.hbm %s726_s0, 16  ;;  %s455_s22 = int_to_ptr.hbm [resolvable:$true] %s454_s22 }
  0x1a   : > { %s456_s24 = scalar_lea.hbm %s455_s22, 8  ;;  %p458_p11 = pneg %p654_p10 }
  0x1b   : > { %p457_p2 = scmp.ne.s32.totalorder %s455_s22, %s456_s24  ;;  %p462_p0 = scmp.lt.s32.totalorder %s455_s22, %s726_s0 }
  0x1c   : > { %p463_p5 = scmp.lt.s32.totalorder %s461_s28, %s456_s24 }
  0x1d   : > { %p459_p12 = pnand %p458_p11, %p457_p2 }
  0x1e   : > { %p464_p7 = por %p463_p5, %p462_p0 }
  0x1f   : > { %p460_p13 = pneg %p459_p12 }
  0x21   : > { %p465_p9 = pnand %p464_p7, %p460_p13 }
  0x23   : > { %468 = shalt.err (!%p465_p9)
}
  0x24   : > { %373 = dma.hbm_to_vmem [thread:$0]  (!%p654_p10), %s158_s10, 128, %s160_s17, %s148_s21  }
  0x25   : > { %168 = sbr.rel (%p621_p8) target bundleno = 327 (0x147), region = 32  ;;  %s671_s4 = sand.u32 (!%p621_p8), 1, %s546_s13  }
  0x26   : > { %s351_s7 = sshll.u32 (!%p621_p8), %s671_s4, 3  ;;  %s171_s8 = scalar_lea.sflag (!%p621_p8), [#allocation3], %s671_s4 }
  0x27   : > { %s174_s9 = scalar_lea.vmem (!%p621_p8), [#allocation2], %s351_s7 }
  0x2a   : > { %529 = dma.done.wait (%p608_p4), %s171_s8, 128  }
  0x2b   : > { %531 = vsyncadd (%p608_p4), %s171_s8, 4294967168 }
  0x2c   : > { %533 = dma.done.wait (%p41_p1), [#allocation6], 16  }
  0x2d   : > { %535 = vsyncadd (%p41_p1), [#allocation6], 4294967280  ;;  %vm204_vm0 = vcmask 261120   ;;  %v203_v0 = vld [vmem:[%s174_s9] sm:$0xff]  ;;  %v557_v2 = vmov 32.0   ;;  %s355_s18 = sshll.u32 %s599_s16, 3 }
  0x2e   : > { %v205_v1 = vsel %vm204_vm0, %v203_v0, 0.0  ;;  %418 = vrcp.f32 %v557_v2  ;;  %v416_v27 = vld [vmem:[#allocation5] ss:$0 sm:$0xff]  ;;  %s259_s11 = scalar_lea.hbm %s729_s3, %s355_s18  ;;  %v417_v30 = vld [vmem:[%s728_s2] ss:$0 sm:$0xff]  ;;  %s202_s21 = scalar_lea.vmem [#allocation7], %s351_s7 }
  0x2f   : > { %206 = vadd.xlane.f32.xlu0 %v205_v1  ;;  %s261_s22 = sshll.u32 %s202_s21, 4  ;;  %s263_s24 = sshll.u32 %s259_s11, 4  ;;  %s262_s22 = int_to_ptr.vmem [resolvable:$true] %s261_s22  ;;  %s264_s24 = int_to_ptr.hbm [resolvable:$true] %s263_s24 }
  0x30   : > { %s249_s16 = scalar_lea.sflag [#allocation4], %s671_s4  ;;  %s498_s25 = sshra.s32 %s264_s24, 4  ;;  %s499_s25 = int_to_ptr.hbm [resolvable:$true] %s498_s25 }
  0x31   : > { %s500_s27 = scalar_lea.hbm %s499_s25, 8  ;;  %s504_s6 = scalar_lea.hbm %s729_s3, 16 }
  0x32   : > { %p501_p1 = scmp.ne.s32.totalorder %s499_s25, %s500_s27  ;;  %p505_p9 = scmp.lt.s32.totalorder %s499_s25, %s729_s3 }
  0x33   : > { %p506_p10 = scmp.lt.s32.totalorder %s504_s6, %s500_s27 }
  0x34   : > { %v419_v3 = vpop.eup %418  ;;  %p502_p4 = pnand %p501_p1, %p644_p3 }
  0x35   : > { %v209_v4 = vmul.f32 32.0, %v419_v3  ;;  %vm213_vm1 = vweird.f32 %v419_v3  ;;  %p507_p2 = por %p506_p10, %p505_p9 }
  0x36   : > { %p503_p8 = pneg %p502_p4 }
  0x37   : > { %v210_v5 = vsub.f32 1.0, %v209_v4 }
  0x38   : > { %p508_p11 = pnand %p507_p2, %p503_p8 }
  0x39   : > { %v211_v6 = vmul.f32 %v419_v3, %v210_v5 }
  0x3b   : > { %v212_v7 = vadd.f32 %v419_v3, %v211_v6 }
  0x3d   : > { %v214_v8 = vsel %vm213_vm1, %v419_v3, %v212_v7 }
  0xa2   : > { %v207_v9 = vpop.xlane.xlu0 %206 }
  0xa3   : > { %v215_v10 = vmul.f32 %v214_v8, %v207_v9 }
  0xa5   : > { %v216_v11 = vsub.f32 %v203_v0, %v215_v10 }
  0xa7   : > { %v217_v12 = vmul.f32 %v216_v11, %v216_v11 }
  0xa9   : > { %v218_v13 = vsel %vm204_vm0, %v217_v12, 0.0 }
  0xaa   : > { %219 = vadd.xlane.f32.xlu0 %v218_v13 }
 0x11d   : > { %v220_v14 = vpop.xlane.xlu0 %219 }
 0x11e   : > { %v221_v15 = vmul.f32 0.032258064, %v220_v14 }
 0x120   : > { %420 = vrsqrt.f32 %v221_v15  ;;  %vm229_vm2 = vcmp.eq.f32.partialorder %v221_v15, inf  ;;  %v232_v23 = vand.u32 2147483648, %v221_v15  ;;  %vm231_vm3 = vcmp.eq.f32.partialorder %v221_v15, 0.0 }
 0x126   : > { %v421_v16 = vpop.eup %420 }
 0x127   : > { %v223_v17 = vmul.f32 %v421_v16, %v221_v15 }
 0x129   : > { %v224_v18 = vmul.f32 %v421_v16, %v223_v17 }
 0x12b   : > { %v225_v19 = vmul.f32 0.5, %v224_v18 }
 0x12d   : > { %v226_v20 = vsub.f32 1.5, %v225_v19 }
 0x12f   : > { %v227_v21 = vmul.f32 %v421_v16, %v226_v20 }
 0x131   : > { %v228_v22 = vmul.f32 %v227_v21, %v221_v15 }
 0x133   : > { %v230_v24 = vsel %vm229_vm2, %v221_v15, %v228_v22 }
 0x134   : > { %v233_v25 = vsel %vm231_vm3, %v232_v23, %v230_v24 }
 0x135   : > { %v234_v26 = vadd.f32 1e-06, %v233_v25 }
 0x137   : > { %422 = vrcp.f32 %v234_v26 }
 0x13d   : > { %v423_v28 = vpop.eup %422 }
 0x13e   : > { %v238_v29 = vmul.f32 %v423_v28, %v216_v11 }
 0x140   : > { %v242_v31 = vmul.f32 %v416_v27, %v238_v29 }
 0x142   : > { %v246_v32 = vadd.f32 %v417_v30, %v242_v31 }
 0x144   : > { %247 = vst.msk [vmem:[%s202_s21] sm:$0xff] %vm204_vm0, %v246_v32 }
 0x145   : > { %511 = shalt.err (!%p508_p11)
}
 0x146   : > { %364 = dma.vmem_to_hbm [thread:$0]  (%p644_p3), %s262_s22, 128, %s264_s24, %s249_s16  }
 0x147 PF: > { %s275_s4 = sand.u32 1, %s542_s12   ;;  %p735_p12 = scmp.ge.s32.totalorder %s554_s15, 2 }
 0x148   : > { %s276_s9 = scalar_lea.sflag [#allocation4], %s275_s4 }
 0x149   : > { %p375_p13 = pnand %p735_p12, %p613_p6 }
 0x14b   : > { %p376_p0 = pneg %p375_p13 }
 0x14d   : > { %537 = dma.done.wait (%p376_p0), %s276_s9, 128  }
 0x14e   : > { %539 = vsyncadd (%p376_p0), %s276_s9, 4294967168  ;;  %p17_p5 = scmp.ge.s32.totalorder %s631_s26, 4   ;;  %s736_s12 = smov %s546_s13 }
 0x14f   : > { %s737_s13 = smov %s550_s14  ;;  %s738_s14 = smov %s640_s29 }
 0x150   : > { %s739_s15 = smov %s631_s26  ;;  %19 = sbr.rel (!%p17_p5) target bundleno = 6 (0x6), region = 81 }
 0x155   :  { %282 = vsyncpa [#allocation3], 1 }
 0x156   :  { %284 = vsyncpa [#allocation3 + $0x1], 1 }
 0x157   :  { %285 = vsyncpa [#allocation6], 1 }
 0x158   :  { %286 = vsyncpa [#allocation4], 1 }
 0x159   :  { %288 = vsyncpa [#allocation4 + $0x1], 1 }

</bundles_post_ra>
